<compile_context>
chip_gen: v5e
topology: v5e:2x2
jax: 0.10.0
libtpu: 0.0.40
codegen_flags: <defaults>
</compile_context>

<pallas_src>
import math

import jax
import jax.numpy as jnp
from jax.experimental import pallas as pl
from jax.experimental.pallas import tpu as pltpu

IN_FEATURES = 3
HIDDEN = 64
OUT_FEATURES = 28 * 28          # 784 (stored at true width — no lane padding)


def decoder_kernel(x_ref, w1_ref, b1_ref, w2_ref, b2_ref, o_ref):
    # x_ref: (TB, 3)   w1_ref: (3, 64)   b1_ref: (1, 64)
    # w2_ref: (64, 784) b2_ref: (1, 784) o_ref: (TB, 784)
    x = x_ref[...]
    w1 = w1_ref[...]

    # First layer (K=3): three VPU broadcast-FMAs — cheaper than a degenerate
    # MXU matmul and leaves the MXU free for layer 2.
    h = (x[:, 0:1] * w1[0:1, :]
         + x[:, 1:2] * w1[1:2, :]
         + x[:, 2:3] * w1[2:3, :]
         + b1_ref[...])
    h = jnp.maximum(h, 0.0)                                   # ReLU (VPU)

    # Second layer on the MXU with f32 accumulation; stored at true 784 width.
    o_ref[...] = jnp.dot(h, w2_ref[...],
                         preferred_element_type=jnp.float32) + b2_ref[...]


def _device_tile_config():
    """Per-generation (max batch tile, explicit VMEM budget or None)."""
    kind = ""
    try:
        kind = jax.devices()[0].device_kind.lower()
    except Exception:
        pass
    if "v5 lite" in kind or "v5e" in kind or "v5lite" in kind:
        # ~6 MiB out + ~1 MiB x (lane-padded) + ~0.5 MiB weights, double-buffered
        return 1024, None                       # fits 16 MiB scoped default
    if "v6" in kind:
        return 2048, None                       # ~15 MiB: fits 32 MiB scoped default
    if "7" in kind:                             # v7x: only 64 MiB physical VMEM
        # out 2*4096*784*4 ≈ 24.5 MiB + lane-padded x 2*4096*128*4 = 4 MiB + weights
        return 4096, 40 << 20
    return 1024, None                           # unknown generation: conservative


def _choose_tiling(B, max_tb):
    """Pick (tb, b_pad): bound batch-padding waste, keep tb <= max_tb, and give
    the v7x megacore at least two grid steps when the batch is large enough."""
    b8 = -(-B // 8) * 8                         # sublane-aligned batch
    tb = min(max_tb, b8)
    while tb > 8:
        b_pad = -(-b8 // tb) * tb
        if (b_pad - B) * 8 <= max(B, 64):       # padding waste <= ~12.5%
            break
        tb = max(8, ((tb // 2) // 8) * 8)
    b_pad = -(-b8 // tb) * tb
    if b_pad // tb == 1 and b8 >= 256:          # >=2 steps so both v7x TCs work
        tb = -(-(b8 // 2) // 8) * 8
        b_pad = -(-b8 // tb) * tb
    return tb, b_pad


def decoder_forward(x, w1, b1, w2, b2, *, max_tb=None, vmem_limit_bytes=None):
    """x: (B, 3) f32; w1: (3, 64); b1: (1, 64); w2: (64, 784); b2: (1, 784)."""
    B = x.shape[0]
    if max_tb is None:
        max_tb, dev_vmem = _device_tile_config()
        if vmem_limit_bytes is None:
            vmem_limit_bytes = dev_vmem

    tb, b_pad = _choose_tiling(B, max_tb)
    if b_pad != B:
        x = jnp.pad(x, ((0, b_pad - B), (0, 0)))
    grid = (b_pad // tb,)

    flops = 2 * b_pad * (IN_FEATURES * HIDDEN + HIDDEN * OUT_FEATURES)
    bytes_accessed = 4 * (
        b_pad * IN_FEATURES + b_pad * OUT_FEATURES               # activations
        + IN_FEATURES * HIDDEN + HIDDEN                          # layer 1 params
        + HIDDEN * OUT_FEATURES + OUT_FEATURES                   # layer 2 params
    )

    out = pl.pallas_call(
        decoder_kernel,
        out_shape=jax.ShapeDtypeStruct((b_pad, OUT_FEATURES), jnp.float32),
        grid=grid,
        in_specs=[
            pl.BlockSpec((tb, IN_FEATURES), lambda i: (i, 0)),       # x streams
            pl.BlockSpec((IN_FEATURES, HIDDEN), lambda i: (0, 0)),   # w1 resident
            pl.BlockSpec((1, HIDDEN), lambda i: (0, 0)),             # b1 resident
            pl.BlockSpec((HIDDEN, OUT_FEATURES), lambda i: (0, 0)),  # w2 resident
            pl.BlockSpec((1, OUT_FEATURES), lambda i: (0, 0)),       # b2 resident
        ],
        out_specs=pl.BlockSpec((tb, OUT_FEATURES), lambda i: (i, 0)),
        compiler_params=pltpu.CompilerParams(
            dimension_semantics=("parallel",),                       # v7x megacore
            vmem_limit_bytes=vmem_limit_bytes),
        cost_estimate=pl.CostEstimate(
            flops=flops, transcendentals=0, bytes_accessed=bytes_accessed),
    )(x, w1, b1, w2, b2)

    # Drop only the (bounded) batch padding; output width is already 784.
    return out if b_pad == B else out[:B]


def init_params(key):
    # Deterministic init mimicking PyTorch's default Linear init
    # (uniform(-1/sqrt(fan_in), 1/sqrt(fan_in)) for weights and biases).
    k1, k2, k3, k4 = jax.random.split(key, 4)
    bound1 = 1.0 / math.sqrt(IN_FEATURES)
    bound2 = 1.0 / math.sqrt(HIDDEN)
    w1 = jax.random.uniform(k1, (IN_FEATURES, HIDDEN), jnp.float32,
                            minval=-bound1, maxval=bound1)
    b1 = jax.random.uniform(k2, (1, HIDDEN), jnp.float32,
                            minval=-bound1, maxval=bound1)
    w2 = jax.random.uniform(k3, (HIDDEN, OUT_FEATURES), jnp.float32,
                            minval=-bound2, maxval=bound2)
    b2 = jax.random.uniform(k4, (1, OUT_FEATURES), jnp.float32,
                            minval=-bound2, maxval=bound2)
    return w1, b1, w2, b2


if __name__ == "__main__":
    key = jax.random.PRNGKey(0)
    pkey, xkey = jax.random.split(key)

    w1, b1, w2, b2 = init_params(pkey)

    # Small batch, deliberately NOT a multiple of 8 to exercise the padded
    # tail path. Input is (batch, 3) as implied by Linear(3, 64).
    B = 5
    x = jax.random.normal(xkey, (B, IN_FEATURES), jnp.float32)

    out = decoder_forward(x, w1, b1, w2, b2)
    out = jax.block_until_ready(out)

    # Pure-JAX reference check of the forward semantics.
    ref = jnp.maximum(x @ w1 + b1, 0.0) @ w2 + b2
    assert out.shape == (B, OUT_FEATURES)
    assert jnp.allclose(out, ref, atol=1e-4, rtol=1e-4)

    print("KERNEL_OK")
</pallas_src>

<mosaic_0001>
module attributes {stable_mosaic.version = 11 : i64} {
  func.func @decoder_kernel(%arg0: i32, %arg1: memref<8x3xf32, #tpu.memory_space<vmem>>, %arg2: memref<3x64xf32, #tpu.memory_space<vmem>>, %arg3: memref<1x64xf32, #tpu.memory_space<vmem>>, %arg4: memref<64x784xf32, #tpu.memory_space<vmem>>, %arg5: memref<1x784xf32, #tpu.memory_space<vmem>>, %arg6: memref<8x784xf32, #tpu.memory_space<vmem>>) attributes {dimension_semantics = [#tpu.dimension_semantics<parallel>], iteration_bounds = array<i64: 1>, scalar_prefetch = 0 : i64, scratch_operands = 0 : i64, tpu.core_type = #tpu.core_type<tc>, window_params = [{transform_indices = @transform_0, window_bounds = array<i64: 8, 3>}, {pipeline_mode = #tpu.pipeline_mode<synchronous>, transform_indices = @transform_1, window_bounds = array<i64: 3, 64>}, {pipeline_mode = #tpu.pipeline_mode<synchronous>, transform_indices = @transform_2, window_bounds = array<i64: 1, 64>}, {pipeline_mode = #tpu.pipeline_mode<synchronous>, transform_indices = @transform_3, window_bounds = array<i64: 64, 784>}, {pipeline_mode = #tpu.pipeline_mode<synchronous>, transform_indices = @transform_4, window_bounds = array<i64: 1, 784>}, {transform_indices = @transform_5, window_bounds = array<i64: 8, 784>}]} {
    %c0 = arith.constant 0 : index
    %c0_0 = arith.constant 0 : index
    %0 = vector.load %arg1[%c0, %c0_0] : memref<8x3xf32, #tpu.memory_space<vmem>>, vector<8x3xf32>
    %c0_1 = arith.constant 0 : index
    %c0_2 = arith.constant 0 : index
    %1 = vector.load %arg2[%c0_1, %c0_2] : memref<3x64xf32, #tpu.memory_space<vmem>>, vector<3x64xf32>
    %2 = vector.extract_strided_slice %0 {offsets = [0, 0], sizes = [8, 1], strides = [1, 1]} : vector<8x3xf32> to vector<8x1xf32>
    %3 = vector.extract_strided_slice %1 {offsets = [0, 0], sizes = [1, 64], strides = [1, 1]} : vector<3x64xf32> to vector<1x64xf32>
    %4 = vector.broadcast %2 : vector<8x1xf32> to vector<8x64xf32>
    %5 = vector.broadcast %3 : vector<1x64xf32> to vector<8x64xf32>
    %6 = arith.mulf %4, %5 : vector<8x64xf32>
    %7 = vector.extract_strided_slice %0 {offsets = [0, 1], sizes = [8, 1], strides = [1, 1]} : vector<8x3xf32> to vector<8x1xf32>
    %8 = vector.extract_strided_slice %1 {offsets = [1, 0], sizes = [1, 64], strides = [1, 1]} : vector<3x64xf32> to vector<1x64xf32>
    %9 = vector.broadcast %7 : vector<8x1xf32> to vector<8x64xf32>
    %10 = vector.broadcast %8 : vector<1x64xf32> to vector<8x64xf32>
    %11 = arith.mulf %9, %10 : vector<8x64xf32>
    %12 = arith.addf %6, %11 : vector<8x64xf32>
    %13 = vector.extract_strided_slice %0 {offsets = [0, 2], sizes = [8, 1], strides = [1, 1]} : vector<8x3xf32> to vector<8x1xf32>
    %14 = vector.extract_strided_slice %1 {offsets = [2, 0], sizes = [1, 64], strides = [1, 1]} : vector<3x64xf32> to vector<1x64xf32>
    %15 = vector.broadcast %13 : vector<8x1xf32> to vector<8x64xf32>
    %16 = vector.broadcast %14 : vector<1x64xf32> to vector<8x64xf32>
    %17 = arith.mulf %15, %16 : vector<8x64xf32>
    %18 = arith.addf %12, %17 : vector<8x64xf32>
    %c0_3 = arith.constant 0 : index
    %c0_4 = arith.constant 0 : index
    %19 = vector.load %arg3[%c0_3, %c0_4] : memref<1x64xf32, #tpu.memory_space<vmem>>, vector<1x64xf32>
    %20 = vector.broadcast %19 : vector<1x64xf32> to vector<8x64xf32>
    %21 = arith.addf %18, %20 : vector<8x64xf32>
    %cst = arith.constant 0.000000e+00 : f32
    %22 = vector.broadcast %cst : f32 to vector<8x64xf32>
    %23 = arith.maximumf %21, %22 : vector<8x64xf32>
    %c0_5 = arith.constant 0 : index
    %c0_6 = arith.constant 0 : index
    %24 = vector.load %arg4[%c0_5, %c0_6] : memref<64x784xf32, #tpu.memory_space<vmem>>, vector<64x784xf32>
    %cst_7 = arith.constant dense<0.000000e+00> : vector<8x784xf32>
    %25 = tpu.matmul %23, %24, %cst_7 {dimension_numbers = #tpu.dot_dimension_numbers<[1], [0], [0], [1], [0, 0, 1, 1], [], []>} : vector<8x64xf32>, vector<64x784xf32>, vector<8x784xf32> -> vector<8x784xf32>
    %c0_8 = arith.constant 0 : index
    %c0_9 = arith.constant 0 : index
    %26 = vector.load %arg5[%c0_8, %c0_9] : memref<1x784xf32, #tpu.memory_space<vmem>>, vector<1x784xf32>
    %27 = vector.broadcast %26 : vector<1x784xf32> to vector<8x784xf32>
    %28 = arith.addf %25, %27 : vector<8x784xf32>
    %c0_10 = arith.constant 0 : index
    %c0_11 = arith.constant 0 : index
    %29 = vector.load %arg6[%c0_10, %c0_11] : memref<8x784xf32, #tpu.memory_space<vmem>>, vector<8x784xf32>
    tpu.vector_store %arg6[%c0_10, %c0_11], %28 {strides = array<i32>} : memref<8x784xf32, #tpu.memory_space<vmem>>, vector<8x784xf32>,
    return
  }
  func.func @transform_0(%arg0: i32) -> (i32, i32) {
    %c0_i32 = arith.constant 0 : i32
    %c0_i32_0 = arith.constant 0 : i32
    return %arg0, %c0_i32 : i32, i32
  }
  func.func @transform_1(%arg0: i32) -> (i32, i32) {
    %c0_i32 = arith.constant 0 : i32
    %c0_i32_0 = arith.constant 0 : i32
    %c0_i32_1 = arith.constant 0 : i32
    return %c0_i32, %c0_i32_0 : i32, i32
  }
  func.func @transform_2(%arg0: i32) -> (i32, i32) {
    %c0_i32 = arith.constant 0 : i32
    %c0_i32_0 = arith.constant 0 : i32
    %c0_i32_1 = arith.constant 0 : i32
    return %c0_i32, %c0_i32_0 : i32, i32
  }
  func.func @transform_3(%arg0: i32) -> (i32, i32) {
    %c0_i32 = arith.constant 0 : i32
    %c0_i32_0 = arith.constant 0 : i32
    %c0_i32_1 = arith.constant 0 : i32
    return %c0_i32, %c0_i32_0 : i32, i32
  }
  func.func @transform_4(%arg0: i32) -> (i32, i32) {
    %c0_i32 = arith.constant 0 : i32
    %c0_i32_0 = arith.constant 0 : i32
    %c0_i32_1 = arith.constant 0 : i32
    return %c0_i32, %c0_i32_0 : i32, i32
  }
  func.func @transform_5(%arg0: i32) -> (i32, i32) {
    %c0_i32 = arith.constant 0 : i32
    %c0_i32_0 = arith.constant 0 : i32
    return %arg0, %c0_i32 : i32, i32
  }
}

</mosaic_0001>

<bundles_post_ra>
// kernel: tpu_custom_call.1
= control target key start
LH: loop header
LB: loop body
LE: loop exit
PB: predicated region body
PF: predicated region fallthrough
CT: control target
= control target key end

     0   :  { %10 = vsyncpa [#allocation3], 0  ;;  %s433_s0 = inlined_call_operand.vmem [shape: f32[8,3], index: 0, kind: input, shape index: {}]   ;;  %s434_s1 = inlined_call_operand.vmem [shape: f32[3,64], index: 1, kind: input, shape index: {}]   ;;  %s435_s2 = inlined_call_operand.vmem [shape: f32[1,64], index: 2, kind: input, shape index: {}]   ;;  %s436_s3 = inlined_call_operand.hbm [shape: f32[64,784], index: 3, kind: input, shape index: {}]   ;;  %s437_s4 = inlined_call_operand.vmem [shape: f32[1,784], index: 4, kind: input, shape index: {}]   ;;  %s438_s5 = inlined_call_operand.hbm [shape: f32[8,784], index: 5, kind: output, shape index: {}]  }
   0x1   :  { %11 = vsyncpa [#allocation4], 0  ;;  %s22_s20 = sshll.u32 %s436_s3, 4  ;;  %s378_s21 = smov [#allocation2]   ;;  %s23_s20 = int_to_ptr.hbm [resolvable:$true] %s22_s20 }
   0x2   :  { %s24_s22 = sshll.u32 %s378_s21, 4  ;;  %s379_s23 = smov 896   ;;  %s25_s22 = int_to_ptr.vmem [resolvable:$true] %s24_s22 }
   0x3   :  { %s380_s24 = smov 56  }
   0x4   :  { %30 = dma.hbm_to_vmem [thread:$0]  %s23_s20, 7168, %s25_s22, [#allocation3], %s379_s23, %s379_s23, %s380_s24  }
   0x5   :  { %374 = dma.done.wait [#allocation3], 7168  }
   0x6   :  { %375 = vsyncadd [#allocation3], 4294960128  ;;  %v381_v0 = vmov 0   ;;  %v382_v1 = vmov 2   ;;  %v37_v2 = vld [vmem:[%s433_s0] sm:$0xff]  ;;  %v115_v3 = vld [vmem:[#allocation2 + $0x188] sm:$0xff] }
   0x7   :  { %321 = vset.pattern.permute.xlu0 %v381_v0  ;;  %323 = vset.pattern.permute.xlu1 %v382_v1  ;;  %v116_v4 = vld [vmem:[#allocation2 + $0x190] sm:$0xff]  ;;  %v117_v5 = vld [vmem:[#allocation2 + $0x198] sm:$0xff]  ;;  %v110_v8 = vld [vmem:[#allocation2 + $0x160] sm:$0xff]  ;;  %v383_v9 = vmov 1   ;;  %vm138_vm0 = vcmask 523264   ;;  %s297_s7 = sshll.u32 %s438_s5, 4  ;;  %s298_s7 = int_to_ptr.hbm [resolvable:$true] %s297_s7 }
   0x8   :  { %41 = vperm.xlu0 %321, %v37_v2   ;;  %54 = vperm.xlu1 %323, %v37_v2   ;;  %v108_v6 = vld [vmem:[#allocation2 + $0x150] sm:$0xff]  ;;  %v109_v7 = vld [vmem:[#allocation2 + $0x158] sm:$0xff]  ;;  %v102_v11 = vld [vmem:[#allocation2 + $0x120] sm:$0xff]  ;;  %vm288_vm1 = vcmask 130048  }
   0x9   :  { %150 = vmatpush.msra.mxu0 %v115_v3  ;;  %170 = vmatpush.msra.mxu1 %v116_v4  ;;  %v101_v10 = vld [vmem:[#allocation2 + $0x118] sm:$0xff]  ;;  %v103_v12 = vld [vmem:[#allocation2 + $0x128] sm:$0xff]  ;;  %v94_v13 = vld [vmem:[#allocation2 + $0xe0] sm:$0xff] }
   0xa   :  { %190 = vmatpush.msra.mxu2 %v117_v5  ;;  %v95_v14 = vld [vmem:[#allocation2 + $0xe8] sm:$0xff]  ;;  %v96_v15 = vld [vmem:[#allocation2 + $0xf0] sm:$0xff]  ;;  %v118_v16 = vld [vmem:[#allocation2 + $0x1a0] sm:$0xff] }
   0xb   :  { %151 = vmatpush.msra.mxu0 %v108_v6  ;;  %171 = vmatpush.msra.mxu1 %v109_v7  ;;  %v87_v17 = vld [vmem:[#allocation2 + $0xa8] sm:$0xff]  ;;  %v88_v18 = vld [vmem:[#allocation2 + $0xb0] sm:$0xff]  ;;  %v89_v19 = vld [vmem:[#allocation2 + $0xb8] sm:$0xff] }
   0xc   :  { %191 = vmatpush.msra.mxu2 %v110_v8  ;;  %v111_v20 = vld [vmem:[#allocation2 + $0x168] sm:$0xff]  ;;  %210 = vmatpush.msra.mxu3 %v118_v16  ;;  %v80_v21 = vld [vmem:[#allocation2 + $0x70] sm:$0xff]  ;;  %v81_v22 = vld [vmem:[#allocation2 + $0x78] sm:$0xff] }
   0xd   :  { %152 = vmatpush.msra.mxu0 %v101_v10  ;;  %172 = vmatpush.msra.mxu1 %v102_v11  ;;  %v82_v23 = vld [vmem:[#allocation2 + $0x80] sm:$0xff]  ;;  %v104_v24 = vld [vmem:[#allocation2 + $0x130] sm:$0xff]  ;;  %v73_v25 = vld [vmem:[#allocation2 + $0x38] sm:$0xff] }
   0xe   :  { %192 = vmatpush.msra.mxu2 %v103_v12  ;;  %211 = vmatpush.msra.mxu3 %v111_v20  ;;  %v74_v26 = vld [vmem:[#allocation2 + $0x40] sm:$0xff]  ;;  %v75_v27 = vld [vmem:[#allocation2 + $0x48] sm:$0xff]  ;;  %v97_v28 = vld [vmem:[#allocation2 + $0xf8] sm:$0xff] }
   0xf   :  { %153 = vmatpush.msra.mxu0 %v94_v13  ;;  %173 = vmatpush.msra.mxu1 %v95_v14  ;;  %v66_v29 = vld [vmem:[#allocation2] sm:$0xff]  ;;  %v67_v30 = vld [vmem:[#allocation2 + $0x8] sm:$0xff]  ;;  %v68_v31 = vld [vmem:[#allocation2 + $0x10] sm:$0xff] }
  0x10   :  { %322 = vset.pattern.permute.xlu0 %v383_v9  ;;  %193 = vmatpush.msra.mxu2 %v96_v15  ;;  %v90_v32 = vld [vmem:[#allocation2 + $0xc0] sm:$0xff]  ;;  %v119_v33 = vld [vmem:[#allocation2 + $0x1a8] sm:$0xff]  ;;  %v120_v34 = vld [vmem:[#allocation2 + $0x1b0] sm:$0xff] }
  0x11   :  { %47 = vperm.xlu0 %322, %v37_v2   ;;  %154 = vmatpush.msra.mxu0 %v87_v17  ;;  %v121_v35 = vld [vmem:[#allocation2 + $0x1b8] sm:$0xff]  ;;  %v83_v36 = vld [vmem:[#allocation2 + $0x88] sm:$0xff]  ;;  %v112_v37 = vld [vmem:[#allocation2 + $0x170] sm:$0xff] }
  0x12   :  { %174 = vmatpush.msra.mxu1 %v88_v18  ;;  %194 = vmatpush.msra.mxu2 %v89_v19  ;;  %v113_v38 = vld [vmem:[#allocation2 + $0x178] sm:$0xff]  ;;  %v114_v39 = vld [vmem:[#allocation2 + $0x180] sm:$0xff]  ;;  %v76_v40 = vld [vmem:[#allocation2 + $0x50] sm:$0xff] }
  0x13   :  { %155 = vmatpush.msra.mxu0 %v80_v21  ;;  %212 = vmatpush.msra.mxu3 %v104_v24  ;;  %v105_v41 = vld [vmem:[#allocation2 + $0x138] sm:$0xff]  ;;  %v106_v42 = vld [vmem:[#allocation2 + $0x140] sm:$0xff]  ;;  %v107_v43 = vld [vmem:[#allocation2 + $0x148] sm:$0xff] }
  0x14   :  { %175 = vmatpush.msra.mxu1 %v81_v22  ;;  %195 = vmatpush.msra.mxu2 %v82_v23  ;;  %v69_v44 = vld [vmem:[#allocation2 + $0x18] sm:$0xff]  ;;  %v98_v45 = vld [vmem:[#allocation2 + $0x100] sm:$0xff]  ;;  %v99_v46 = vld [vmem:[#allocation2 + $0x108] sm:$0xff] }
  0x15   :  { %156 = vmatpush.msra.mxu0 %v73_v25  ;;  %213 = vmatpush.msra.mxu3 %v97_v28  ;;  %v100_v47 = vld [vmem:[#allocation2 + $0x110] sm:$0xff]  ;;  %v91_v48 = vld [vmem:[#allocation2 + $0xc8] sm:$0xff]  ;;  %v93_v50 = vld [vmem:[#allocation2 + $0xd8] sm:$0xff] }
  0x16   :  { %176 = vmatpush.msra.mxu1 %v74_v26  ;;  %196 = vmatpush.msra.mxu2 %v75_v27  ;;  %v92_v49 = vld [vmem:[#allocation2 + $0xd0] sm:$0xff]  ;;  %v85_v52 = vld [vmem:[#allocation2 + $0x98] sm:$0xff]  ;;  %v86_v53 = vld [vmem:[#allocation2 + $0xa0] sm:$0xff] }
  0x17   :  { %157 = vmatpush.msra.mxu0 %v66_v29  ;;  %214 = vmatpush.msra.mxu3 %v90_v32  ;;  %v84_v51 = vld [vmem:[#allocation2 + $0x90] sm:$0xff]  ;;  %v77_v54 = vld [vmem:[#allocation2 + $0x58] sm:$0xff]  ;;  %v78_v55 = vld [vmem:[#allocation2 + $0x60] sm:$0xff] }
  0x18   :  { %177 = vmatpush.msra.mxu1 %v67_v30  ;;  %197 = vmatpush.msra.mxu2 %v68_v31  ;;  %v79_v56 = vld [vmem:[#allocation2 + $0x68] sm:$0xff]  ;;  %v70_v57 = vld [vmem:[#allocation2 + $0x20] sm:$0xff]  ;;  %v72_v59 = vld [vmem:[#allocation2 + $0x30] sm:$0xff] }
  0x19   :  { %324 = vset.pattern.permute.xlu0 %v382_v1  ;;  %230 = vmatpush.msrb.mxu0 %v119_v33  ;;  %v71_v58 = vld [vmem:[#allocation2 + $0x28] sm:$0xff]  ;;  %v38_v61 = vld [vmem:[%s434_s1] sm:$0x7] }
  0x1a   :  { %250 = vmatpush.msrb.mxu1 %v120_v34  ;;  %270 = vmatpush.msrb.mxu2 %v121_v35  ;;  %v44_v62 = vperm.slane %v38_v61, 0  ;;  %v50_v63 = vperm.slane %v38_v61, 1  ;;  %v57_v0 = vperm.slane %v38_v61, 2  ;;  %v325_v7 = vld [vmem:[%s435_s2] ss:$0 sm:$0xff]  ;;  %s384_s2 = smov [#allocation5]  }
  0x1b   :  { %215 = vmatpush.msra.mxu3 %v83_v36  ;;  %231 = vmatpush.msrb.mxu0 %v112_v37  ;;  %v122_v11 = vld [vmem:[%s437_s4] sm:$0x7f]  ;;  %s295_s4 = sshll.u32 %s384_s2, 4  ;;  %s296_s4 = int_to_ptr.vmem [resolvable:$true] %s295_s4 }
  0x1c   :  { %251 = vmatpush.msrb.mxu1 %v113_v38  ;;  %271 = vmatpush.msrb.mxu2 %v114_v39  ;;  %v124_v12 = vperm.slane %v122_v11, 0  ;;  %v125_v13 = vperm.slane %v122_v11, 1  ;;  %v126_v18 = vperm.slane %v122_v11, 2  ;;  %v127_v19 = vperm.slane %v122_v11, 3 }
  0x1d   :  { %216 = vmatpush.msra.mxu3 %v76_v40  ;;  %232 = vmatpush.msrb.mxu0 %v105_v41  ;;  %v128_v20 = vperm.slane %v122_v11, 4  ;;  %v129_v21 = vperm.slane %v122_v11, 5  ;;  %v130_v30 = vperm.slane %v122_v11, 6 }
  0x1e   :  { %252 = vmatpush.msrb.mxu1 %v106_v42  ;;  %272 = vmatpush.msrb.mxu2 %v107_v43 }
  0x1f   :  { %217 = vmatpush.msra.mxu3 %v69_v44  ;;  %233 = vmatpush.msrb.mxu0 %v98_v45 }
  0x20   :  { %253 = vmatpush.msrb.mxu1 %v99_v46  ;;  %273 = vmatpush.msrb.mxu2 %v100_v47 }
  0x21   :  { %234 = vmatpush.msrb.mxu0 %v91_v48 }
  0x22   :  { %254 = vmatpush.msrb.mxu1 %v92_v49  ;;  %274 = vmatpush.msrb.mxu2 %v93_v50 }
  0x23   :  { %235 = vmatpush.msrb.mxu0 %v84_v51 }
  0x24   :  { %255 = vmatpush.msrb.mxu1 %v85_v52  ;;  %275 = vmatpush.msrb.mxu2 %v86_v53 }
  0x25   :  { %236 = vmatpush.msrb.mxu0 %v77_v54 }
  0x26   :  { %256 = vmatpush.msrb.mxu1 %v78_v55  ;;  %276 = vmatpush.msrb.mxu2 %v79_v56 }
  0x27   :  { %237 = vmatpush.msrb.mxu0 %v70_v57 }
  0x28   :  { %257 = vmatpush.msrb.mxu1 %v71_v58  ;;  %277 = vmatpush.msrb.mxu2 %v72_v59 }
  0x7a   :  { %v42_v60 = vpop.permute.xlu0 %41  ;;  %v55_v1 = vpop.permute.xlu1 %54 }
  0x7b   :  { %v45_v3 = vmul.f32 %v44_v62, %v42_v60  ;;  %v58_v5 = vmul.f32 %v57_v0, %v55_v1 }
  0x83   :  { %v48_v2 = vpop.permute.xlu0 %47 }
  0x84   :  { %v51_v4 = vmul.f32 %v50_v63, %v48_v2 }
  0x86   :  { %v52_v6 = vadd.f32 %v51_v4, %v45_v3 }
  0x88   :  { %v59_v8 = vadd.f32 %v58_v5, %v52_v6 }
  0x8a   :  { %v64_v9 = vadd.f32 %v325_v7, %v59_v8 }
  0x8c   :  { %v65_v10 = vmax.f32 %v64_v9, 0.0 }
  0x8e   :  { %307 = vmatmul.msk.f32.vlgmr.msra.gmra.mxu0 %vm138_vm0, %v65_v10  ;;  %308 = vmatmul.msk.f32.vlgmr.msra.gmra.mxu1 %vm138_vm0, %v65_v10 }
  0x8f   :  { %309 = vmatmul.msk.f32.vlgmr.msra.gmra.mxu2 %vm138_vm0, %v65_v10  ;;  %310 = vmatmul.msk.f32.vlgmr.msra.gmra.mxu3 %vm138_vm0, %v65_v10 }
  0x96   :  { %311 = vmatmul.msk.f32.vlgmr.msrb.gmra.mxu0 %vm138_vm0, %v65_v10  ;;  %312 = vmatmul.msk.f32.vlgmr.msrb.gmra.mxu1 %vm138_vm0, %v65_v10 }
  0x97   :  { %313 = vmatmul.msk.f32.vlgmr.msrb.gmra.mxu2 %vm138_vm0, %v65_v10 }
 0x10b   :  { %v159_v14 = vpop.f32.mrf.mxu0  ;;  %v179_v15 = vpop.f32.mrf.mxu1 }
 0x10c   :  { %v160_v16 = vadd.f32 %v159_v14, %v124_v12  ;;  %v180_v17 = vadd.f32 %v179_v15, %v125_v13 }
 0x10e   :  { %282 = vst [vmem:[#allocation5] sm:$0xff] %v160_v16 }
 0x10f   :  { %283 = vst [vmem:[#allocation5 + $0x8] sm:$0xff] %v180_v17 }
 0x112   :  { %v199_v22 = vpop.f32.mrf.mxu2  ;;  %v219_v23 = vpop.f32.mrf.mxu3 }
 0x113   :  { %v200_v24 = vadd.f32 %v199_v22, %v126_v18  ;;  %v220_v25 = vadd.f32 %v219_v23, %v127_v19  ;;  %v239_v26 = vpop.f32.mrf.mxu0  ;;  %v259_v27 = vpop.f32.mrf.mxu1 }
 0x114   :  { %v240_v28 = vadd.f32 %v239_v26, %v128_v20  ;;  %v260_v29 = vadd.f32 %v259_v27, %v129_v21 }
 0x115   :  { %284 = vst [vmem:[#allocation5 + $0x10] sm:$0xff] %v200_v24 }
 0x116   :  { %285 = vst [vmem:[#allocation5 + $0x18] sm:$0xff] %v220_v25 }
 0x117   :  { %286 = vst [vmem:[#allocation5 + $0x20] sm:$0xff] %v240_v28 }
 0x118   :  { %287 = vst [vmem:[#allocation5 + $0x28] sm:$0xff] %v260_v29 }
 0x11a   :  { %v279_v31 = vpop.f32.mrf.mxu2 }
 0x11b   :  { %v280_v32 = vadd.f32 %v279_v31, %v130_v30 }
 0x11d   :  { %289 = vst.msk [vmem:[#allocation5 + $0x30] sm:$0xff] %vm288_vm1, %v280_v32 }
 0x11e   :  { %300 = dma.vmem_to_hbm [thread:$0]  %s296_s4, 896, %s298_s7, [#allocation4]  }
 0x11f   :  { %376 = dma.done.wait [#allocation4], 896  }
 0x120   :  { %377 = vsyncadd [#allocation4], 4294966400 }
 0x121   :  { %305 = vsyncpa [#allocation3], 1 }
 0x122   :  { %306 = vsyncpa [#allocation4], 1 }

</bundles_post_ra>
